<compile_context>
chip_gen: v5e
topology: v5e:2x2
jax: 0.10.0
libtpu: 0.0.40
codegen_flags: <defaults>
</compile_context>

<pallas_src>
import jax
import jax.numpy as jnp
from jax import lax
from jax.experimental import pallas as pl
from jax.experimental.pallas import tpu as pltpu

EPS = 1e-5          # BatchNorm2d default eps
NEG_SLOPE = 0.2     # LeakyReLU slope


# ---------------- Pallas kernels ----------------

def _conv_stats_kernel(pt_ref, w_ref, y_ref, s_ref, ss_ref):
    """(Cout, tm) = W[Cout,K] @ patches^T[K,tm]; spill y + per-tile stats."""
    y = jnp.dot(w_ref[...], pt_ref[...], preferred_element_type=jnp.float32)
    y_ref[...] = y.astype(y_ref.dtype)
    # Per-channel partial sums for this row tile only; combined host-side by a
    # tree reduce over tiles (less drift than a sequential f32 accumulator).
    s_ref[...] = jnp.sum(y, axis=1, keepdims=True)[None]          # (1, Cout, 1)
    ss_ref[...] = jnp.sum(y * y, axis=1, keepdims=True)[None]     # (1, Cout, 1)


def _bn_lrelu_kernel(y_ref, scale_ref, shift_ref, o_ref):
    """z = y*scale + shift ; LeakyReLU(0.2)."""
    z = y_ref[...].astype(jnp.float32) * scale_ref[...] + shift_ref[...]
    o_ref[...] = jnp.where(z >= 0, z, NEG_SLOPE * z)


# ---------------- sizing helpers ----------------

def _vmem_limit_and_budget():
    """Per-generation VMEM sizing (v7x 64 MiB physical/TC, v5e/v6e 128 MiB)."""
    try:
        cap = int(pltpu.get_tpu_info().vmem_capacity_bytes)
        if cap <= 0:
            raise ValueError
    except Exception:
        cap = 64 << 20                        # conservative fallback (v7x per-TC)
    limit = (cap // 4) * 3                    # vmem_limit_bytes handed to Mosaic
    budget = max(limit - (4 << 20), 8 << 20)  # headroom for internal scratch
    return limit, budget


def _pick_tm(M, K, Cout, itemsize, budget, cap_tm=8192):
    """Row-tile width: multiple of 128, minimal padded M, largest that fits."""
    def fits(tm):
        conv_call = (2 * K * tm * itemsize          # patch tile, double-buffered
                     + 2 * Cout * K * itemsize      # weight block, double-buffered
                     + 2 * Cout * tm * itemsize     # spilled-y output tile
                     + 3 * Cout * tm * 4            # f32 dot result + temporaries
                     + 4 * Cout * 4 * 2)            # partial-stat tiles
        bn_call = (2 * Cout * tm * itemsize         # spilled-y input tile
                   + 2 * Cout * tm * 4              # f32 output tile
                   + 2 * Cout * tm * 4              # f32 temporaries
                   + 4 * Cout * 4)                  # scale/shift
        return max(conv_call, bn_call) <= budget

    hi = min(cap_tm, -(-M // 128) * 128)
    best_tm, best_mp = None, None
    for tm in range(128, hi + 1, 128):
        if not fits(tm):
            continue
        mp = -(-M // tm) * tm
        if (best_mp is None or mp < best_mp
                or (mp == best_mp and tm > best_tm)):
            best_tm, best_mp = tm, mp
    # TODO(synk): if even tm=128 misses the budget (K enormous), tile K as well.
    return best_tm if best_tm is not None else 128


# ---------------- wrapper ----------------

def cnn_block_forward(x, weight, gamma, beta, *, stride=2,
                      matmul_dtype=jnp.bfloat16):
    """x: [N, Cin, H, W] f32; weight: [Cout, Cin, 4, 4]; gamma/beta: [Cout]."""
    N, Cin, H, W = x.shape
    Cout, Cin_w, KH, KW = weight.shape
    assert Cin_w == Cin

    # ---- host-side prep on the 1x-sized input: cast once, swap N<->Cin,
    #      reflect pad.  (All cheap relative to the 4x patch stream.)
    xt = jnp.transpose(x.astype(matmul_dtype), (1, 0, 2, 3))        # [Cin,N,H,W]
    xpt = jnp.pad(xt, ((0, 0), (0, 0), (1, 1), (1, 1)), mode="reflect")
    Hp, Wp = H + 2, W + 2
    OH = (Hp - KH) // stride + 1
    OW = (Wp - KW) // stride + 1

    # patches^T [K, M] with K=(cin,kh,kw) (matches weight.reshape) and
    # M=(n,oh,ow).  Stacking on axis=1 writes the 4x tensor once, already in
    # its final layout -> no 6-D transpose of the expanded tensor, and it is
    # materialized in bf16 (half-size).
    # TODO(synk): replace with in-kernel patch formation (strided DMA from xpt).
    cols = []
    for kh in range(KH):
        for kw in range(KW):
            cols.append(xpt[:, :,
                            kh:kh + stride * (OH - 1) + 1:stride,
                            kw:kw + stride * (OW - 1) + 1:stride])  # [Cin,N,OH,OW]
    pt = jnp.stack(cols, axis=1).reshape(Cin * KH * KW, N * OH * OW)
    wmat = weight.reshape(Cout, Cin * KH * KW).astype(matmul_dtype)

    K, M = pt.shape
    itemsize = jnp.dtype(matmul_dtype).itemsize
    limit, budget = _vmem_limit_and_budget()
    tm = _pick_tm(M, K, Cout, itemsize, budget)
    Mp = -(-M // tm) * tm
    mt = Mp // tm
    if Mp != M:
        # Zero-pad columns: y there is exactly 0 -> contributes nothing to the
        # partial sums/sumsq; the stats below divide by the true M.
        pt = jnp.pad(pt, ((0, 0), (0, Mp - M)))

    semantics = ("parallel",)   # independent row tiles -> both v7x TCs usable

    # ---- call 1: conv (matmul) + per-tile partial batch stats ----
    y_sp, sums, sumsqs = pl.pallas_call(
        _conv_stats_kernel,
        out_shape=(jax.ShapeDtypeStruct((Cout, Mp), matmul_dtype),
                   jax.ShapeDtypeStruct((mt, Cout, 1), jnp.float32),
                   jax.ShapeDtypeStruct((mt, Cout, 1), jnp.float32)),
        grid_spec=pltpu.PrefetchScalarGridSpec(
            num_scalar_prefetch=0,
            grid=(mt,),
            in_specs=[pl.BlockSpec((K, tm), lambda i: (0, i)),       # patches^T
                      pl.BlockSpec((Cout, K), lambda i: (0, 0))],    # weights
            out_specs=[pl.BlockSpec((Cout, tm), lambda i: (0, i)),   # y spill
                       pl.BlockSpec((1, Cout, 1), lambda i: (i, 0, 0)),
                       pl.BlockSpec((1, Cout, 1), lambda i: (i, 0, 0))]),
        compiler_params=pltpu.CompilerParams(
            dimension_semantics=semantics, vmem_limit_bytes=limit),
        cost_estimate=pl.CostEstimate(
            flops=2 * Cout * K * Mp, transcendentals=0,
            bytes_accessed=(K * Mp * itemsize + Cout * K * itemsize
                            + Cout * Mp * itemsize + 2 * mt * Cout * 4)),
    )(pt, wmat)

    # ---- tiny XLA glue: fold BatchNorm (training-mode batch stats) ----
    s_tot = jnp.sum(sums[:, :, 0], axis=0)          # [Cout]
    ss_tot = jnp.sum(sumsqs[:, :, 0], axis=0)       # [Cout]
    inv_m = 1.0 / M
    mean = s_tot * inv_m
    # NOTE: E[y^2]-E[y]^2 in f32 — fine for conv activations (|mean| ~ std).
    # TODO(synk): centered/Welford per-tile stats if |mean| >> std ever matters.
    var = jnp.maximum(ss_tot * inv_m - mean * mean, 0.0)   # biased (train) var
    scale = gamma.astype(jnp.float32) * lax.rsqrt(var + EPS)
    shift = beta.astype(jnp.float32) - mean * scale

    # ---- call 2: normalize + LeakyReLU on the spilled y (no pt re-stream) ----
    out_t = pl.pallas_call(
        _bn_lrelu_kernel,
        out_shape=jax.ShapeDtypeStruct((Cout, Mp), jnp.float32),
        grid_spec=pltpu.PrefetchScalarGridSpec(
            num_scalar_prefetch=0,
            grid=(mt,),
            in_specs=[pl.BlockSpec((Cout, tm), lambda i: (0, i)),    # y spill
                      pl.BlockSpec((Cout, 1), lambda i: (0, 0)),     # scale
                      pl.BlockSpec((Cout, 1), lambda i: (0, 0))],    # shift
            out_specs=pl.BlockSpec((Cout, tm), lambda i: (0, i))),
        compiler_params=pltpu.CompilerParams(
            dimension_semantics=semantics, vmem_limit_bytes=limit),
        cost_estimate=pl.CostEstimate(
            flops=3 * Cout * Mp, transcendentals=0,
            bytes_accessed=Cout * Mp * itemsize + Cout * Mp * 4 + 2 * Cout * 4),
    )(y_sp, scale.reshape(Cout, 1), shift.reshape(Cout, 1))

    # [Cout, Mp] -> crop padding -> [N, Cout, OH, OW] (cheap leading permute)
    return out_t[:, :M].reshape(Cout, N, OH, OW).transpose(1, 0, 2, 3)


# ---------------- pure-JAX reference (for verification) ----------------

def reference(x, weight, gamma, beta, *, stride=2):
    xp = jnp.pad(x, ((0, 0), (0, 0), (1, 1), (1, 1)), mode="reflect")
    y = lax.conv_general_dilated(
        xp, weight, window_strides=(stride, stride), padding="VALID",
        dimension_numbers=("NCHW", "OIHW", "NCHW"))
    mean = y.mean(axis=(0, 2, 3), keepdims=True)
    var = ((y - mean) ** 2).mean(axis=(0, 2, 3), keepdims=True)   # biased
    z = (y - mean) / jnp.sqrt(var + EPS)
    z = z * gamma.reshape(1, -1, 1, 1) + beta.reshape(1, -1, 1, 1)
    return jnp.where(z >= 0, z, NEG_SLOPE * z)


if __name__ == "__main__":
    key = jax.random.PRNGKey(0)
    kx, kw, kg, kb = jax.random.split(key, 4)

    N, Cin, Cout, H, W = 2, 4, 8, 16, 16
    x = jax.random.normal(kx, (N, Cin, H, W), dtype=jnp.float32)
    weight = 0.1 * jax.random.normal(kw, (Cout, Cin, 4, 4), dtype=jnp.float32)
    gamma = 1.0 + 0.1 * jax.random.normal(kg, (Cout,), dtype=jnp.float32)
    beta = 0.1 * jax.random.normal(kb, (Cout,), dtype=jnp.float32)

    out = cnn_block_forward(x, weight, gamma, beta, stride=2)
    out = jax.block_until_ready(out)

    ref = reference(x, weight, gamma, beta, stride=2)
    assert out.shape == (N, Cout, H // 2, W // 2), out.shape
    # bf16 conv operands + bf16 y spill vs f32 reference -> relaxed tolerance.
    max_err = float(jnp.max(jnp.abs(out - ref)))
    assert max_err < 3e-2, max_err

    print("KERNEL_OK")
</pallas_src>

<mosaic_0001>
module attributes {stable_mosaic.version = 11 : i64} {
  func.func @_conv_stats_kernel(%arg0: i32, %arg1: memref<64x128xbf16, #tpu.memory_space<vmem>>, %arg2: memref<8x64xbf16, #tpu.memory_space<vmem>>, %arg3: memref<8x128xbf16, #tpu.memory_space<vmem>>, %arg4: memref<1x8x1xf32, #tpu.memory_space<vmem>>, %arg5: memref<1x8x1xf32, #tpu.memory_space<vmem>>) attributes {dimension_semantics = [#tpu.dimension_semantics<parallel>], iteration_bounds = array<i64: 1>, scalar_prefetch = 0 : i64, scratch_operands = 0 : i64, tpu.core_type = #tpu.core_type<tc>, window_params = [{transform_indices = @transform_0, window_bounds = array<i64: 64, 128>}, {pipeline_mode = #tpu.pipeline_mode<synchronous>, transform_indices = @transform_1, window_bounds = array<i64: 8, 64>}, {transform_indices = @transform_2, window_bounds = array<i64: 8, 128>}, {transform_indices = @transform_3, window_bounds = array<i64: 1, 8, 1>}, {transform_indices = @transform_4, window_bounds = array<i64: 1, 8, 1>}]} {
    %c0 = arith.constant 0 : index
    %c0_0 = arith.constant 0 : index
    %0 = vector.load %arg2[%c0, %c0_0] : memref<8x64xbf16, #tpu.memory_space<vmem>>, vector<8x64xbf16>
    %c0_1 = arith.constant 0 : index
    %c0_2 = arith.constant 0 : index
    %1 = vector.load %arg1[%c0_1, %c0_2] : memref<64x128xbf16, #tpu.memory_space<vmem>>, vector<64x128xbf16>
    %cst = arith.constant dense<0.000000e+00> : vector<8x128xf32>
    %2 = tpu.matmul %0, %1, %cst {dimension_numbers = #tpu.dot_dimension_numbers<[1], [0], [0], [1], [0, 0, 1, 1], [], []>} : vector<8x64xbf16>, vector<64x128xbf16>, vector<8x128xf32> -> vector<8x128xf32>
    %3 = arith.truncf %2 : vector<8x128xf32> to vector<8x128xbf16>
    %c0_3 = arith.constant 0 : index
    %c0_4 = arith.constant 0 : index
    %4 = vector.load %arg3[%c0_3, %c0_4] : memref<8x128xbf16, #tpu.memory_space<vmem>>, vector<8x128xbf16>
    tpu.vector_store %arg3[%c0_3, %c0_4], %3 {strides = array<i32>} : memref<8x128xbf16, #tpu.memory_space<vmem>>, vector<8x128xbf16>,
    %cst_5 = arith.constant dense<0.000000e+00> : vector<8xf32>
    %5 = vector.multi_reduction <add>, %2, %cst_5 [1] : vector<8x128xf32> to vector<8xf32>
    %6 = vector.shape_cast %5 : vector<8xf32> to vector<8x1xf32>
    %7 = vector.shape_cast %6 : vector<8x1xf32> to vector<1x8x1xf32>
    %c0_6 = arith.constant 0 : index
    %c0_7 = arith.constant 0 : index
    %c0_8 = arith.constant 0 : index
    %8 = vector.load %arg4[%c0_6, %c0_7, %c0_8] : memref<1x8x1xf32, #tpu.memory_space<vmem>>, vector<1x8x1xf32>
    tpu.vector_store %arg4[%c0_6, %c0_7, %c0_8], %7 {strides = array<i32>} : memref<1x8x1xf32, #tpu.memory_space<vmem>>, vector<1x8x1xf32>,
    %9 = arith.mulf %2, %2 : vector<8x128xf32>
    %cst_9 = arith.constant dense<0.000000e+00> : vector<8xf32>
    %10 = vector.multi_reduction <add>, %9, %cst_9 [1] : vector<8x128xf32> to vector<8xf32>
    %11 = vector.shape_cast %10 : vector<8xf32> to vector<8x1xf32>
    %12 = vector.shape_cast %11 : vector<8x1xf32> to vector<1x8x1xf32>
    %c0_10 = arith.constant 0 : index
    %c0_11 = arith.constant 0 : index
    %c0_12 = arith.constant 0 : index
    %13 = vector.load %arg5[%c0_10, %c0_11, %c0_12] : memref<1x8x1xf32, #tpu.memory_space<vmem>>, vector<1x8x1xf32>
    tpu.vector_store %arg5[%c0_10, %c0_11, %c0_12], %12 {strides = array<i32>} : memref<1x8x1xf32, #tpu.memory_space<vmem>>, vector<1x8x1xf32>,
    return
  }
  func.func @transform_0(%arg0: i32) -> (i32, i32) {
    %c0_i32 = arith.constant 0 : i32
    %c0_i32_0 = arith.constant 0 : i32
    return %c0_i32, %arg0 : i32, i32
  }
  func.func @transform_1(%arg0: i32) -> (i32, i32) {
    %c0_i32 = arith.constant 0 : i32
    %c0_i32_0 = arith.constant 0 : i32
    %c0_i32_1 = arith.constant 0 : i32
    return %c0_i32, %c0_i32_0 : i32, i32
  }
  func.func @transform_2(%arg0: i32) -> (i32, i32) {
    %c0_i32 = arith.constant 0 : i32
    %c0_i32_0 = arith.constant 0 : i32
    return %c0_i32, %arg0 : i32, i32
  }
  func.func @transform_3(%arg0: i32) -> (i32, i32, i32) {
    %c0_i32 = arith.constant 0 : i32
    %c0_i32_0 = arith.constant 0 : i32
    %c0_i32_1 = arith.constant 0 : i32
    return %arg0, %c0_i32, %c0_i32_0 : i32, i32, i32
  }
  func.func @transform_4(%arg0: i32) -> (i32, i32, i32) {
    %c0_i32 = arith.constant 0 : i32
    %c0_i32_0 = arith.constant 0 : i32
    %c0_i32_1 = arith.constant 0 : i32
    return %arg0, %c0_i32, %c0_i32_0 : i32, i32, i32
  }
}

</mosaic_0001>

<bundles_post_ra>
// kernel: tpu_custom_call.1
= control target key start
LH: loop header
LB: loop body
LE: loop exit
PB: predicated region body
PF: predicated region fallthrough
CT: control target
= control target key end

     0   :  { %10 = vsyncpa [#allocation3], 0  ;;  %s281_s0 = inlined_call_operand.hbm [shape: bf16[64,128], index: 0, kind: input, shape index: {}]   ;;  %s282_s1 = inlined_call_operand.hbm [shape: bf16[8,64], index: 1, kind: input, shape index: {}]   ;;  %s283_s2 = inlined_call_operand.hbm [shape: bf16[8,128], index: 2, kind: output, shape index: {0}]   ;;  %s284_s3 = inlined_call_operand.vmem [shape: f32[1,8,1], index: 3, kind: output, shape index: {1}]   ;;  %s285_s4 = inlined_call_operand.vmem [shape: f32[1,8,1], index: 4, kind: output, shape index: {2}]  }
   0x1   :  { %11 = vsyncpa [#allocation6], 0 }
   0x2   :  { %12 = vsyncpa [#allocation4], 0  ;;  %s17_s17 = sshll.u32 %s281_s0, 4  ;;  %s236_s18 = smov [#allocation2]   ;;  %s18_s17 = int_to_ptr.hbm [resolvable:$true] %s17_s17 }
   0x3   :  { %s19_s19 = sshll.u32 %s236_s18, 4  ;;  %s31_s22 = sshll.u32 %s282_s1, 4  ;;  %s20_s19 = int_to_ptr.vmem [resolvable:$true] %s19_s19  ;;  %s32_s22 = int_to_ptr.hbm [resolvable:$true] %s31_s22 }
   0x4   :  { %s237_s23 = smov 64   ;;  %s238_s24 = smov 4  }
   0x5   :  { %25 = dma.hbm_to_vmem [thread:$0]  %s18_s17, 512, %s20_s19, [#allocation3], %s237_s23, %s237_s23, %s238_s24  }
   0x6   :  { %s239_s25 = smov [#allocation5]  }
   0x7   :  { %s33_s26 = sshll.u32 %s239_s25, 4  ;;  %s34_s26 = int_to_ptr.vmem [resolvable:$true] %s33_s26 }
   0x8   :  { %36 = dma.hbm_to_vmem [thread:$0]  %s32_s22, 64, %s34_s26, [#allocation6]  }
   0x9   :  { %230 = dma.done.wait [#allocation3], 512  }
   0xa   :  { %231 = vsyncadd [#allocation3], 4294966784 }
   0xb   :  { %232 = dma.done.wait [#allocation6], 64  }
   0xc   :  { %233 = vsyncadd [#allocation6], 4294967232  ;;  %v152_v0 = vld [vmem:[#allocation2 + $0x18] sm:$0xff]  ;;  %v151_v1 = vld [vmem:[#allocation2 + $0x10] sm:$0xff]  ;;  %vm79_vm0 = vcmask 523264   ;;  %s240_s0 = smov [#allocation7]  }
   0xd   :  { %87 = vmatpush.bf16.msra.mxu0 %v152_v0  ;;  %v150_v2 = vld [vmem:[#allocation2 + $0x8] sm:$0xff]  ;;  %v149_v3 = vld [vmem:[#allocation2] sm:$0xff]  ;;  %s111_s1 = sshll.u32 %s240_s0, 4  ;;  %s113_s29 = sshll.u32 %s283_s2, 4  ;;  %vm100_vm1 = vcmask 7168   ;;  %s112_s1 = int_to_ptr.vmem [resolvable:$true] %s111_s1  ;;  %s114_s29 = int_to_ptr.hbm [resolvable:$true] %s113_s29 }
   0xe   :  { %v46_v4 = vld [vmem:[#allocation5] sm:$0xf] }
  0x11   :  { %88 = vmatpush.bf16.msra.mxu0 %v151_v1 }
  0x15   :  { %89 = vmatpush.bf16.msra.mxu0 %v150_v2 }
  0x19   :  { %90 = vmatpush.bf16.msra.mxu0 %v149_v3 }
  0x1c   :  { %148 = vmatmul.msk.bf16.vlgmr.msra.gmra.mxu0 %vm79_vm0, %v46_v4 }
  0x99   :  { %v92_v5 = vpop.f32.mrf.mxu0 }
  0x9a   :  { %v96_v6 = vpack.c.bf16 %v92_v5, %v92_v5  ;;  %98 = vadd.xlane.f32.xlu0 %v92_v5  ;;  %v102_v7 = vmul.f32 %v92_v5, %v92_v5 }
  0x9c   :  { %97 = vst [vmem:[#allocation7] sm:$0xf] %v96_v6 }
  0x9d   :  { %116 = dma.vmem_to_hbm [thread:$0]  %s112_s1, 64, %s114_s29, [#allocation4]  }
  0xa1   :  { %v94_v8 = vpop.f32.mrf.mxu0 }
  0xa2   :  { %103 = vadd.xlane.f32.xlu0 %v102_v7 }
 0x10d   :  { %v99_v9 = vpop.xlane.xlu0 %98 }
 0x10e   :  { %101 = vst.msk [vmem:[%s284_s3] sm:$0xff] %vm100_vm1, %v99_v9 }
 0x115   :  { %v104_v10 = vpop.xlane.xlu0 %103 }
 0x116   :  { %105 = vst.msk [vmem:[%s285_s4] sm:$0xff] %vm100_vm1, %v104_v10 }
 0x117   :  { %234 = dma.done.wait [#allocation4], 64  }
 0x118   :  { %235 = vsyncadd [#allocation4], 4294967232 }
 0x119   :  { %129 = vsyncpa [#allocation3], 1 }
 0x11a   :  { %130 = vsyncpa [#allocation6], 1 }
 0x11b   :  { %131 = vsyncpa [#allocation4], 1 }

</bundles_post_ra>
